<compile_context>
chip_gen: v6e
topology: v6e:2x2x1
jax: 0.10.0
libtpu: 0.0.40
codegen_flags: <defaults>
</compile_context>

<pallas_src>
import jax
import jax.numpy as jnp
from jax.experimental import pallas as pl
from jax.experimental.pallas import tpu as pltpu


def _mlp_softmax_kernel(x_ref,
                        w1_ref, b1_ref,
                        w2_ref, b2_ref,
                        w3_ref, b3_ref,
                        w4_ref, b4_ref,
                        out_ref):
    """Fused MLP forward: 3x (Linear+ReLU) -> Linear -> softmax over classes."""
    # In-kernel f32 -> bf16 cast (cheap VPU op; avoids a wrapper-side HBM pass).
    x = x_ref[...].astype(jnp.bfloat16)

    # Layer 1: bf16 MXU matmul, f32 accumulation, f32 bias + ReLU.
    h = jnp.dot(x, w1_ref[...], preferred_element_type=jnp.float32) + b1_ref[...]
    h = jnp.maximum(h, 0.0).astype(jnp.bfloat16)
    # TODO(synk): Dropout(0.2) is a no-op at inference; not emitted.

    # Layer 2.
    h = jnp.dot(h, w2_ref[...], preferred_element_type=jnp.float32) + b2_ref[...]
    h = jnp.maximum(h, 0.0).astype(jnp.bfloat16)

    # Layer 3.
    h = jnp.dot(h, w3_ref[...], preferred_element_type=jnp.float32) + b3_ref[...]
    h = jnp.maximum(h, 0.0).astype(jnp.bfloat16)

    # Layer 4 (unpadded: 5 output classes).
    logits = jnp.dot(h, w4_ref[...], preferred_element_type=jnp.float32) + b4_ref[...]

    # Numerically stable softmax over the class axis.
    m = jnp.max(logits, axis=-1, keepdims=True)
    e = jnp.exp(logits - m)
    s = jnp.sum(e, axis=-1, keepdims=True)
    out_ref[...] = (e * pl.reciprocal(s, approx=True)).astype(out_ref.dtype)


def prepare_params(params):
    """One-time weight prep (bf16 MXU operands, f32 biases). Hoisted out of the
    per-call hot path so the trace launches no extra cast ops."""
    w1, b1, w2, b2, w3, b3, w4, b4 = params
    return (w1.astype(jnp.bfloat16), b1.astype(jnp.float32),
            w2.astype(jnp.bfloat16), b2.astype(jnp.float32),
            w3.astype(jnp.bfloat16), b3.astype(jnp.float32),
            w4.astype(jnp.bfloat16), b4.astype(jnp.float32))


def _choose_batch_tile(B, tb):
    """Tile rows per grid step: multiple of 8 (sublane rule), capped at 1024,
    aiming for >= 2 grid steps so v7x megacore gets both TensorCores busy."""
    TB = min(tb, B) if tb is not None else min(1024, pl.cdiv(B, 2))
    TB = ((TB + 7) // 8) * 8
    if TB >= B:
        return B          # tiny batch: single whole-batch tile (block == full dim)
    return TB


def portfolio_risk_predictor(x, prepared_params, *, tb=None):
    """x: [B, input_dim] float32. prepared_params from prepare_params().
    Returns [B, 5] softmax probabilities (f32)."""
    w1, b1, w2, b2, w3, b3, w4, b4 = prepared_params
    B, in_dim = x.shape
    h1, h2, h3 = w1.shape[1], w2.shape[1], w3.shape[1]
    n_out = w4.shape[1]

    TB = _choose_batch_tile(B, tb)
    grid = (pl.cdiv(B, TB),)

    def pinned(shape):
        # Same block for every grid step -> parameters stay resident in VMEM.
        return pl.BlockSpec(shape, lambda i: (0, 0))

    flops = 2 * B * (in_dim * h1 + h1 * h2 + h2 * h3 + h3 * n_out)
    transcendentals = B * (n_out + 1)                    # exp + reciprocal per row
    param_bytes = (2 * (in_dim * h1 + h1 * h2 + h2 * h3 + h3 * n_out)
                   + 4 * (h1 + h2 + h3 + n_out))
    bytes_accessed = B * in_dim * 4 + B * n_out * 4 + param_bytes

    out = pl.pallas_call(
        _mlp_softmax_kernel,
        out_shape=jax.ShapeDtypeStruct((B, n_out), jnp.float32),
        grid=grid,
        in_specs=[
            pl.BlockSpec((TB, in_dim), lambda i: (i, 0)),        # x tile (f32)
            pinned((in_dim, h1)), pinned((1, h1)),
            pinned((h1, h2)),     pinned((1, h2)),
            pinned((h2, h3)),     pinned((1, h3)),
            pinned((h3, n_out)),  pinned((1, n_out)),
        ],
        out_specs=pl.BlockSpec((TB, n_out), lambda i: (i, 0)),
        compiler_params=pltpu.CompilerParams(
            dimension_semantics=("parallel",)),
        cost_estimate=pl.CostEstimate(
            flops=flops,
            transcendentals=transcendentals,
            bytes_accessed=bytes_accessed),
    )(x, w1, b1, w2, b2, w3, b3, w4, b4)

    return out


def init_params(key, input_dim=50, hidden_dim=128):
    """Deterministic init mimicking nn.Linear default (U[-1/sqrt(fan_in), +...])."""
    dims = [input_dim, hidden_dim, hidden_dim // 2, 32, 5]
    params = []
    for i in range(4):
        fan_in, fan_out = dims[i], dims[i + 1]
        key, kw, kb = jax.random.split(key, 3)
        bound = 1.0 / (fan_in ** 0.5)
        w = jax.random.uniform(kw, (fan_in, fan_out), jnp.float32, -bound, bound)
        # biases kept 2D [1, fan_out] for clean TPU lane layout / broadcasting
        b = jax.random.uniform(kb, (1, fan_out), jnp.float32, -bound, bound)
        params += [w, b]
    return tuple(params)


def _reference(x, params):
    w1, b1, w2, b2, w3, b3, w4, b4 = params
    h = jnp.maximum(x @ w1 + b1, 0.0)
    h = jnp.maximum(h @ w2 + b2, 0.0)
    h = jnp.maximum(h @ w3 + b3, 0.0)
    logits = h @ w4 + b4
    return jax.nn.softmax(logits, axis=1)


if __name__ == "__main__":
    key = jax.random.PRNGKey(0)
    kx, kx2, kp = jax.random.split(key, 3)

    batch, input_dim, hidden_dim = 2, 50, 128
    params = init_params(kp, input_dim=input_dim, hidden_dim=hidden_dim)
    pparams = prepare_params(params)   # hoisted one-time weight prep

    # Small single-tile case (grid = 1 step).
    x = jax.random.normal(kx, (batch, input_dim), jnp.float32)
    out = jax.block_until_ready(portfolio_risk_predictor(x, pparams))
    ref = _reference(x, params)
    assert out.shape == (batch, 5)
    assert jnp.allclose(jnp.sum(out, axis=1), 1.0, atol=5e-3)
    assert jnp.allclose(out, ref, atol=2e-2, rtol=2e-2)  # bf16 matmul tolerance

    # Multi-step grid cases to exercise batch tiling / pinned weights.
    x2 = jax.random.normal(kx2, (64, input_dim), jnp.float32)
    out2 = jax.block_until_ready(portfolio_risk_predictor(x2, pparams, tb=16))
    ref2 = _reference(x2, params)
    assert out2.shape == (64, 5)
    assert jnp.allclose(jnp.sum(out2, axis=1), 1.0, atol=5e-3)
    assert jnp.allclose(out2, ref2, atol=2e-2, rtol=2e-2)

    # Default tiling path (TB = 32, 2 grid steps -> both TCs busy on v7x).
    out3 = jax.block_until_ready(portfolio_risk_predictor(x2, pparams))
    assert out3.shape == (64, 5)
    assert jnp.allclose(out3, ref2, atol=2e-2, rtol=2e-2)

    print("KERNEL_OK")
</pallas_src>

<mosaic_0001>
module attributes {stable_mosaic.version = 11 : i64} {
  func.func @_mlp_softmax_kernel(%arg0: i32, %arg1: memref<2x50xf32, #tpu.memory_space<vmem>>, %arg2: memref<50x128xbf16, #tpu.memory_space<vmem>>, %arg3: memref<1x128xf32, #tpu.memory_space<vmem>>, %arg4: memref<128x64xbf16, #tpu.memory_space<vmem>>, %arg5: memref<1x64xf32, #tpu.memory_space<vmem>>, %arg6: memref<64x32xbf16, #tpu.memory_space<vmem>>, %arg7: memref<1x32xf32, #tpu.memory_space<vmem>>, %arg8: memref<32x5xbf16, #tpu.memory_space<vmem>>, %arg9: memref<1x5xf32, #tpu.memory_space<vmem>>, %arg10: memref<2x5xf32, #tpu.memory_space<vmem>>) attributes {dimension_semantics = [#tpu.dimension_semantics<parallel>], iteration_bounds = array<i64: 1>, scalar_prefetch = 0 : i64, scratch_operands = 0 : i64, tpu.core_type = #tpu.core_type<tc>, window_params = [{transform_indices = @transform_0, window_bounds = array<i64: 2, 50>}, {pipeline_mode = #tpu.pipeline_mode<synchronous>, transform_indices = @transform_1, window_bounds = array<i64: 50, 128>}, {pipeline_mode = #tpu.pipeline_mode<synchronous>, transform_indices = @transform_2, window_bounds = array<i64: 1, 128>}, {pipeline_mode = #tpu.pipeline_mode<synchronous>, transform_indices = @transform_3, window_bounds = array<i64: 128, 64>}, {pipeline_mode = #tpu.pipeline_mode<synchronous>, transform_indices = @transform_4, window_bounds = array<i64: 1, 64>}, {pipeline_mode = #tpu.pipeline_mode<synchronous>, transform_indices = @transform_5, window_bounds = array<i64: 64, 32>}, {pipeline_mode = #tpu.pipeline_mode<synchronous>, transform_indices = @transform_6, window_bounds = array<i64: 1, 32>}, {pipeline_mode = #tpu.pipeline_mode<synchronous>, transform_indices = @transform_7, window_bounds = array<i64: 32, 5>}, {pipeline_mode = #tpu.pipeline_mode<synchronous>, transform_indices = @transform_8, window_bounds = array<i64: 1, 5>}, {transform_indices = @transform_9, window_bounds = array<i64: 2, 5>}]} {
    %c0 = arith.constant 0 : index
    %c0_0 = arith.constant 0 : index
    %0 = vector.load %arg1[%c0, %c0_0] : memref<2x50xf32, #tpu.memory_space<vmem>>, vector<2x50xf32>
    %1 = arith.truncf %0 : vector<2x50xf32> to vector<2x50xbf16>
    %c0_1 = arith.constant 0 : index
    %c0_2 = arith.constant 0 : index
    %2 = vector.load %arg2[%c0_1, %c0_2] : memref<50x128xbf16, #tpu.memory_space<vmem>>, vector<50x128xbf16>
    %cst = arith.constant dense<0.000000e+00> : vector<2x128xf32>
    %3 = tpu.matmul %1, %2, %cst {dimension_numbers = #tpu.dot_dimension_numbers<[1], [0], [0], [1], [0, 0, 1, 1], [], []>} : vector<2x50xbf16>, vector<50x128xbf16>, vector<2x128xf32> -> vector<2x128xf32>
    %c0_3 = arith.constant 0 : index
    %c0_4 = arith.constant 0 : index
    %4 = vector.load %arg3[%c0_3, %c0_4] : memref<1x128xf32, #tpu.memory_space<vmem>>, vector<1x128xf32>
    %5 = vector.broadcast %4 : vector<1x128xf32> to vector<2x128xf32>
    %6 = arith.addf %3, %5 : vector<2x128xf32>
    %cst_5 = arith.constant 0.000000e+00 : f32
    %7 = vector.broadcast %cst_5 : f32 to vector<2x128xf32>
    %8 = arith.maximumf %6, %7 : vector<2x128xf32>
    %9 = arith.truncf %8 : vector<2x128xf32> to vector<2x128xbf16>
    %c0_6 = arith.constant 0 : index
    %c0_7 = arith.constant 0 : index
    %10 = vector.load %arg4[%c0_6, %c0_7] : memref<128x64xbf16, #tpu.memory_space<vmem>>, vector<128x64xbf16>
    %cst_8 = arith.constant dense<0.000000e+00> : vector<2x64xf32>
    %11 = tpu.matmul %9, %10, %cst_8 {dimension_numbers = #tpu.dot_dimension_numbers<[1], [0], [0], [1], [0, 0, 1, 1], [], []>} : vector<2x128xbf16>, vector<128x64xbf16>, vector<2x64xf32> -> vector<2x64xf32>
    %c0_9 = arith.constant 0 : index
    %c0_10 = arith.constant 0 : index
    %12 = vector.load %arg5[%c0_9, %c0_10] : memref<1x64xf32, #tpu.memory_space<vmem>>, vector<1x64xf32>
    %13 = vector.broadcast %12 : vector<1x64xf32> to vector<2x64xf32>
    %14 = arith.addf %11, %13 : vector<2x64xf32>
    %cst_11 = arith.constant 0.000000e+00 : f32
    %15 = vector.broadcast %cst_11 : f32 to vector<2x64xf32>
    %16 = arith.maximumf %14, %15 : vector<2x64xf32>
    %17 = arith.truncf %16 : vector<2x64xf32> to vector<2x64xbf16>
    %c0_12 = arith.constant 0 : index
    %c0_13 = arith.constant 0 : index
    %18 = vector.load %arg6[%c0_12, %c0_13] : memref<64x32xbf16, #tpu.memory_space<vmem>>, vector<64x32xbf16>
    %cst_14 = arith.constant dense<0.000000e+00> : vector<2x32xf32>
    %19 = tpu.matmul %17, %18, %cst_14 {dimension_numbers = #tpu.dot_dimension_numbers<[1], [0], [0], [1], [0, 0, 1, 1], [], []>} : vector<2x64xbf16>, vector<64x32xbf16>, vector<2x32xf32> -> vector<2x32xf32>
    %c0_15 = arith.constant 0 : index
    %c0_16 = arith.constant 0 : index
    %20 = vector.load %arg7[%c0_15, %c0_16] : memref<1x32xf32, #tpu.memory_space<vmem>>, vector<1x32xf32>
    %21 = vector.broadcast %20 : vector<1x32xf32> to vector<2x32xf32>
    %22 = arith.addf %19, %21 : vector<2x32xf32>
    %cst_17 = arith.constant 0.000000e+00 : f32
    %23 = vector.broadcast %cst_17 : f32 to vector<2x32xf32>
    %24 = arith.maximumf %22, %23 : vector<2x32xf32>
    %25 = arith.truncf %24 : vector<2x32xf32> to vector<2x32xbf16>
    %c0_18 = arith.constant 0 : index
    %c0_19 = arith.constant 0 : index
    %26 = vector.load %arg8[%c0_18, %c0_19] : memref<32x5xbf16, #tpu.memory_space<vmem>>, vector<32x5xbf16>
    %cst_20 = arith.constant dense<0.000000e+00> : vector<2x5xf32>
    %27 = tpu.matmul %25, %26, %cst_20 {dimension_numbers = #tpu.dot_dimension_numbers<[1], [0], [0], [1], [0, 0, 1, 1], [], []>} : vector<2x32xbf16>, vector<32x5xbf16>, vector<2x5xf32> -> vector<2x5xf32>
    %c0_21 = arith.constant 0 : index
    %c0_22 = arith.constant 0 : index
    %28 = vector.load %arg9[%c0_21, %c0_22] : memref<1x5xf32, #tpu.memory_space<vmem>>, vector<1x5xf32>
    %29 = vector.broadcast %28 : vector<1x5xf32> to vector<2x5xf32>
    %30 = arith.addf %27, %29 : vector<2x5xf32>
    %cst_23 = arith.constant dense<0xFF800000> : vector<2xf32>
    %31 = vector.multi_reduction <maximumf>, %30, %cst_23 [1] : vector<2x5xf32> to vector<2xf32>
    %32 = vector.shape_cast %31 : vector<2xf32> to vector<2x1xf32>
    %33 = vector.broadcast %32 : vector<2x1xf32> to vector<2x5xf32>
    %34 = arith.subf %30, %33 : vector<2x5xf32>
    %35 = math.exp %34 : vector<2x5xf32>
    %cst_24 = arith.constant dense<0.000000e+00> : vector<2xf32>
    %36 = vector.multi_reduction <add>, %35, %cst_24 [1] : vector<2x5xf32> to vector<2xf32>
    %37 = vector.shape_cast %36 : vector<2xf32> to vector<2x1xf32>
    %38 = tpu.reciprocal %37 {approx = true} : vector<2x1xf32> -> vector<2x1xf32>
    %39 = vector.broadcast %38 : vector<2x1xf32> to vector<2x5xf32>
    %40 = arith.mulf %35, %39 : vector<2x5xf32>
    %c0_25 = arith.constant 0 : index
    %c0_26 = arith.constant 0 : index
    %41 = vector.load %arg10[%c0_25, %c0_26] : memref<2x5xf32, #tpu.memory_space<vmem>>, vector<2x5xf32>
    tpu.vector_store %arg10[%c0_25, %c0_26], %40 {strides = array<i32>} : memref<2x5xf32, #tpu.memory_space<vmem>>, vector<2x5xf32>,
    return
  }
  func.func @transform_0(%arg0: i32) -> (i32, i32) {
    %c0_i32 = arith.constant 0 : i32
    %c0_i32_0 = arith.constant 0 : i32
    return %arg0, %c0_i32 : i32, i32
  }
  func.func @transform_1(%arg0: i32) -> (i32, i32) {
    %c0_i32 = arith.constant 0 : i32
    %c0_i32_0 = arith.constant 0 : i32
    %c0_i32_1 = arith.constant 0 : i32
    return %c0_i32, %c0_i32_0 : i32, i32
  }
  func.func @transform_2(%arg0: i32) -> (i32, i32) {
    %c0_i32 = arith.constant 0 : i32
    %c0_i32_0 = arith.constant 0 : i32
    %c0_i32_1 = arith.constant 0 : i32
    return %c0_i32, %c0_i32_0 : i32, i32
  }
  func.func @transform_3(%arg0: i32) -> (i32, i32) {
    %c0_i32 = arith.constant 0 : i32
    %c0_i32_0 = arith.constant 0 : i32
    %c0_i32_1 = arith.constant 0 : i32
    return %c0_i32, %c0_i32_0 : i32, i32
  }
  func.func @transform_4(%arg0: i32) -> (i32, i32) {
    %c0_i32 = arith.constant 0 : i32
    %c0_i32_0 = arith.constant 0 : i32
    %c0_i32_1 = arith.constant 0 : i32
    return %c0_i32, %c0_i32_0 : i32, i32
  }
  func.func @transform_5(%arg0: i32) -> (i32, i32) {
    %c0_i32 = arith.constant 0 : i32
    %c0_i32_0 = arith.constant 0 : i32
    %c0_i32_1 = arith.constant 0 : i32
    return %c0_i32, %c0_i32_0 : i32, i32
  }
  func.func @transform_6(%arg0: i32) -> (i32, i32) {
    %c0_i32 = arith.constant 0 : i32
    %c0_i32_0 = arith.constant 0 : i32
    %c0_i32_1 = arith.constant 0 : i32
    return %c0_i32, %c0_i32_0 : i32, i32
  }
  func.func @transform_7(%arg0: i32) -> (i32, i32) {
    %c0_i32 = arith.constant 0 : i32
    %c0_i32_0 = arith.constant 0 : i32
    %c0_i32_1 = arith.constant 0 : i32
    return %c0_i32, %c0_i32_0 : i32, i32
  }
  func.func @transform_8(%arg0: i32) -> (i32, i32) {
    %c0_i32 = arith.constant 0 : i32
    %c0_i32_0 = arith.constant 0 : i32
    %c0_i32_1 = arith.constant 0 : i32
    return %c0_i32, %c0_i32_0 : i32, i32
  }
  func.func @transform_9(%arg0: i32) -> (i32, i32) {
    %c0_i32 = arith.constant 0 : i32
    %c0_i32_0 = arith.constant 0 : i32
    return %arg0, %c0_i32 : i32, i32
  }
}

</mosaic_0001>

<bundles_post_ra>
// kernel: tpu_custom_call.1
= control target key start
LH: loop header
LB: loop body
LE: loop exit
PB: predicated region body
PF: predicated region fallthrough
CT: control target
= control target key end

     0   :  { %v559_v1 = vmov 0.0   ;;  %vm75_vm0 = vcmask 1040384   ;;  %vm560_vm1 = vmmov 0   ;;  %vm71_vm2 = vcmask 408576   ;;  %s713_s0 = inlined_call_operand.vmem [shape: f32[2,50], index: 0, kind: input, shape index: {}]   ;;  %s714_s1 = inlined_call_operand.vmem [shape: bf16[50,128], index: 1, kind: input, shape index: {}]   ;;  %s715_s2 = inlined_call_operand.vmem [shape: f32[1,128], index: 2, kind: input, shape index: {}]   ;;  %s716_s3 = inlined_call_operand.vmem [shape: bf16[128,64], index: 3, kind: input, shape index: {}]   ;;  %s717_s4 = inlined_call_operand.vmem [shape: f32[1,64], index: 4, kind: input, shape index: {}]   ;;  %s718_s5 = inlined_call_operand.vmem [shape: bf16[64,32], index: 5, kind: input, shape index: {}]   ;;  %s719_s6 = inlined_call_operand.vmem [shape: f32[1,32], index: 6, kind: input, shape index: {}]   ;;  %s720_s7 = inlined_call_operand.vmem [shape: bf16[32,5], index: 7, kind: input, shape index: {}]   ;;  %s721_s8 = inlined_call_operand.vmem [shape: f32[1,5], index: 8, kind: input, shape index: {}]   ;;  %s722_s9 = inlined_call_operand.hbm [shape: f32[2,5], index: 9, kind: output, shape index: {}]  }
   0x1   :  { %v515_v0 = vld [vmem:[%s714_s1 + $0x18] ss:$0 sps:$4 sm:$0x11]   ;;  %460 = vmatprep.subr.bf16.mxu0 %v559_v1  ;;  %472 = vmatprep.subr.bf16.mxu1 %v559_v1  ;;  %v516_v3 = vld [vmem:[%s714_s1 + $0x10] sm:$0xff]   ;;  %v517_v6 = vld [vmem:[%s714_s1 + $0x8] sm:$0xff]  }
   0x2   :  { %v77_v2 = vsel %vm75_vm0, %v515_v0, 0  ;;  %468 = vmatprep.mubr.msk.bf16.mxu0 %vm560_vm1, %v559_v1  ;;  %v519_v4 = vld [vmem:[%s716_s3 + $0x38] sm:$0xff]   ;;  %488 = vmatprep.mubr.msk.bf16.mxu1 %vm560_vm1, %v559_v1  ;;  %v520_v5 = vld [vmem:[%s716_s3 + $0x30] sm:$0xff]   ;;  %v518_v7 = vld [vmem:[%s714_s1] sm:$0xff]  }
   0x3   :  { %461 = vmatpush3.bf16.msra.mxu0 %v77_v2  ;;  %473 = vmatpush3.bf16.msra.mxu1 %v519_v4  ;;  %v34_v8 = vld [vmem:[%s713_s0] sm:$0x3]  ;;  %v521_v9 = vld [vmem:[%s716_s3 + $0x28] sm:$0xff]  }
   0x4   :  { %462 = vmatprep.subr.bf16.mxu0 %v559_v1  ;;  %474 = vmatprep.subr.bf16.mxu1 %v559_v1  ;;  %v522_v10 = vld [vmem:[%s716_s3 + $0x20] sm:$0xff]   ;;  %v35_v11 = vpack.c.bf16 %v34_v8, %v34_v8 }
   0x7   :  { %463 = vmatpush3.bf16.msra.mxu0 %v516_v3  ;;  %475 = vmatpush3.bf16.msra.mxu1 %v520_v5 }
   0x8   :  { %464 = vmatprep.subr.bf16.mxu0 %v559_v1  ;;  %476 = vmatprep.subr.bf16.mxu1 %v559_v1 }
   0xb   :  { %465 = vmatpush3.bf16.msra.mxu0 %v517_v6  ;;  %477 = vmatpush3.bf16.msra.mxu1 %v521_v9 }
   0xc   :  { %466 = vmatprep.subr.bf16.mxu0 %v559_v1  ;;  %478 = vmatprep.subr.bf16.mxu1 %v559_v1 }
   0xf   :  { %467 = vmatpush3.bf16.msra.mxu0 %v518_v7 }
  0x10   :  { %492 = vmatprep.subr.bf16.mxu0 %v559_v1 }
  0x11   :  { %14 = vsyncpa [#allocation3], 0  ;;  %479 = vmatpush3.bf16.msra.mxu1 %v522_v10  ;;  %v523_v12 = vld [vmem:[%s716_s3 + $0x18] sm:$0xff]   ;;  %v524_v13 = vld [vmem:[%s716_s3 + $0x10] sm:$0xff]   ;;  %vm273_vm3 = vcmask 523264   ;;  %vm342_vm4 = vcmask 261120  }
  0x12   :  { %469 = vmatmul.mubr.msk.bf16.vlgmr.msra.gmra.mxu0 %vm71_vm2, %v35_v11  ;;  %480 = vmatprep.subr.bf16.mxu1 %v559_v1  ;;  %v525_v14 = vld [vmem:[%s716_s3 + $0x8] sm:$0xff]   ;;  %v526_v15 = vld [vmem:[%s716_s3] sm:$0xff]   ;;  %v527_v16 = vld [vmem:[%s718_s5 + $0x18] sm:$0xff]   ;;  %vm386_vm5 = vcmask 33792  }
  0x13   :  { %500 = vmatprep.mubr.msk.bf16.mxu0 %vm560_vm1, %v559_v1  ;;  %493 = vmatpush3.bf16.msra.mxu0 %v527_v16  ;;  %v528_v17 = vld [vmem:[%s718_s5 + $0x10] sm:$0xff]   ;;  %v413_v18 = vld [vmem:[%s715_s2] ss:$0 sm:$0xff]  ;;  %v529_v26 = vld [vmem:[%s718_s5 + $0x8] sm:$0xff]  }
  0x14   :  { %494 = vmatprep.subr.bf16.mxu0 %v559_v1  ;;  %v530_v27 = vld [vmem:[%s718_s5] sm:$0xff]   ;;  %v531_v34 = vld [vmem:[%s720_s7 + $0x8] sm:$0xff]  }
  0x15   :  { %481 = vmatpush3.bf16.msra.mxu1 %v523_v12  ;;  %v419_v28 = vld [vmem:[%s717_s4] ss:$0 sm:$0xff] }
  0x16   :  { %482 = vmatprep.subr.bf16.mxu1 %v559_v1  ;;  %v532_v37 = vld [vmem:[%s720_s7] sm:$0xff]  }
  0x17   :  { %495 = vmatpush3.bf16.msra.mxu0 %v528_v17  ;;  %v428_v38 = vld [vmem:[%s719_s6] ss:$0 sm:$0xff]  ;;  %s561_s6 = smov [#allocation2]  }
  0x18   :  { %496 = vmatprep.subr.bf16.mxu0 %v559_v1  ;;  %v434_v46 = vld [vmem:[%s721_s8] ss:$0 sm:$0xff]  ;;  %s405_s7 = sshll.u32 %s561_s6, 4  ;;  %s406_s7 = int_to_ptr.vmem [resolvable:$true] %s405_s7 }
  0x19   :  { %483 = vmatpush3.bf16.msra.mxu1 %v524_v13  ;;  %s537_s8 = scalar_lea.vmem %s406_s7, 32  ;;  %p542_p1 = scmp.lt.s32.totalorder %s406_s7, %s406_s7 }
  0x1a   :  { %484 = vmatprep.subr.bf16.mxu1 %v559_v1  ;;  %p538_p0 = scmp.ne.s32.totalorder %s406_s7, %s537_s8  ;;  %p543_p2 = scmp.lt.s32.totalorder %s537_s8, %s537_s8 }
  0x1b   :  { %497 = vmatpush3.bf16.msra.mxu0 %v529_v26 }
  0x1c   :  { %498 = vmatprep.subr.bf16.mxu0 %v559_v1  ;;  %p544_p3 = por %p543_p2, %p542_p1 }
  0x1d   :  { %485 = vmatpush3.bf16.msra.mxu1 %v525_v14 }
  0x1e   :  { %486 = vmatprep.subr.bf16.mxu1 %v559_v1  ;;  %p545_p4 = pnand %p544_p3, %p538_p0 }
  0x1f   :  { %499 = vmatpush3.bf16.msra.mxu0 %v530_v27 }
  0x20   :  { %504 = vmatprep.subr.bf16.mxu0 %v559_v1 }
  0x21   :  { %487 = vmatpush3.bf16.msra.mxu1 %v526_v15 }
  0xd2   :  { %v113_v19 = vpop.f32.mrf.mxu0 }
  0xd3   :  { %v114_v20 = vadd.f32 %v413_v18, %v113_v19 }
  0xd4   :  { %v470_v21 = vpop.f32.mrf.mxu0 }
  0xd5   :  { %v119_v22 = vmax.f32 %v114_v20, 0.0 }
  0xd6   :  { %v116_v23 = vpop.f32.mrf.mxu0 }
  0xd7   :  { %v120_v24 = vpack.c.bf16 %v119_v22, %v119_v22 }
  0xd8   :  { %v471_v25 = vpop.f32.mrf.mxu0 }
  0xd9   :  { %489 = vmatmul.mubr.bf16.vlgmr.msra.gmra.mxu1 %v120_v24 }
 0x199   :  { %v226_v29 = vpop.f32.mrf.mxu1 }
 0x19a   :  { %v227_v30 = vadd.f32 %v419_v28, %v226_v29 }
 0x19b   :  { %v490_v31 = vpop.f32.mrf.mxu1 }
 0x19c   :  { %v232_v32 = vmax.f32 %v227_v30, 0.0 }
 0x19d   :  { %v229_v33 = vpop.f32.mrf.mxu1 }
 0x19e   :  { %v233_v35 = vpack.c.bf16 %v232_v32, %v232_v32 }
 0x19f   :  { %v491_v36 = vpop.f32.mrf.mxu1 }
 0x1a0   :  { %501 = vmatmul.mubr.msk.bf16.vlgmr.msra.gmra.mxu0 %vm273_vm3, %v233_v35 }
 0x1a1   :  { %505 = vmatpush3.bf16.msra.mxu0 %v531_v34  ;;  %508 = vmatprep.mubr.msk.bf16.mxu0 %vm560_vm1, %v559_v1 }
 0x1a2   :  { %506 = vmatprep.subr.bf16.mxu0 %v559_v1 }
 0x1a5   :  { %507 = vmatpush3.bf16.msra.mxu0 %v532_v37 }
 0x260   :  { %v311_v39 = vpop.f32.mrf.mxu0 }
 0x261   :  { %v312_v40 = vadd.f32 %v428_v38, %v311_v39 }
 0x262   :  { %v502_v41 = vpop.f32.mrf.mxu0 }
 0x263   :  { %v317_v42 = vmax.f32 %v312_v40, 0.0 }
 0x264   :  { %v314_v43 = vpop.f32.mrf.mxu0 }
 0x265   :  { %v318_v44 = vpack.c.bf16 %v317_v42, %v317_v42 }
 0x266   :  { %v503_v45 = vpop.f32.mrf.mxu0 }
 0x267   :  { %509 = vmatmul.mubr.msk.bf16.vlgmr.msra.gmra.mxu0 %vm342_vm4, %v318_v44 }
 0x327   :  { %v380_v47 = vpop.f32.mrf.mxu0 }
 0x328   :  { %v381_v48 = vadd.f32 %v434_v46, %v380_v47 }
 0x329   :  { %v510_v49 = vpop.f32.mrf.mxu0 }
 0x32a   :  { %v387_v50 = vsel %vm386_vm5, %v381_v48, -inf }
 0x32b   :  { %388 = vmax.xlane.f32.xlu0 %v387_v50  ;;  %v383_v51 = vpop.f32.mrf.mxu0 }
 0x32d   :  { %v511_v52 = vpop.f32.mrf.mxu0 }
 0x3b4   :  { %v389_v53 = vpop.xlane.xlu0 %388 }
 0x3b5   :  { %v390_v54 = vsub.f32 %v381_v48, %v389_v53 }
 0x3b7   :  { %v391_v55 = vmul.f32 1.442695, %v390_v54 }
 0x3b9   :  { %533 = vpow2.f32 %v391_v55 }
 0x3c6   :  { %v534_v56 = vpop.eup %533 }
 0x3c7   :  { %v393_v57 = vsel %vm386_vm5, %v534_v56, 0.0 }
 0x3c8   :  { %394 = vadd.xlane.f32.xlu0 %v393_v57 }
 0x451   :  { %v395_v58 = vpop.xlane.xlu0 %394 }
 0x452   :  { %535 = vrcp.f32 %v395_v58 }
 0x45f   :  { %v536_v59 = vpop.eup %535 }
 0x460   :  { %v397_v60 = vmul.f32 %v536_v59, %v534_v56 }
 0x462   :  { %398 = vst.msk [vmem:[#allocation2] sm:$0x3] %vm386_vm5, %v397_v60 }
 0x463   :  { %548 = shalt.err (!%p545_p4)
}
 0x464   :  { %408 = dma.vmem_to_hbm [thread:$0]  %s406_s7, 32, %s722_s9, [#allocation3]  }
 0x465   :  { %557 = dma.done.wait [#allocation3], 32  }
 0x466   :  { %558 = vsyncadd [#allocation3], 4294967264 }
 0x467   :  { %412 = vsyncpa [#allocation3], 1 }

</bundles_post_ra>
